<compile_context>
chip_gen: v5e
topology: v5e:2x2
jax: 0.10.0
libtpu: 0.0.40
codegen_flags: <defaults>
</compile_context>

<pallas_src>
import jax
import jax.numpy as jnp
from jax.experimental import pallas as pl
from jax.experimental.pallas import tpu as pltpu

EPS = 1e-6

# Explicit VMEM limit that is safe on every generation (v5e/v6e 128 MiB,
# v7x 64 MiB physical); tiles are sized against a smaller working-set budget
# so double-buffering always fits.
_VMEM_LIMIT_BYTES = 48 * 1024 * 1024
_VMEM_TILE_BUDGET = 28 * 1024 * 1024


# --------------------------------------------------------------------------
# Tile sizing
# --------------------------------------------------------------------------
def _pick_row_tile(n_rows, feat, *, n_bufs, fixed_bytes=0, cap=1024, itemsize=4,
                   budget_bytes=_VMEM_TILE_BUDGET):
    """Largest sublane-aligned divisor of n_rows whose double-buffered working
    set (n_bufs * row_tile * feat * itemsize + fixed_bytes) fits the VMEM
    budget.  Big tiles amortize the ~0.35 us per-grid-step pipeline overhead
    (8-row tiles run far below HBM roofline)."""
    align = 8 * max(1, 4 // itemsize)        # f32 -> 8 rows, bf16 -> 16, int8 -> 32
    assert n_rows % align == 0, "flattened batch*seq rows must be sublane-aligned"
    per_row = n_bufs * itemsize * feat
    max_rt = max(align, (budget_bytes - fixed_bytes) // per_row)
    max_rt = min(max_rt, cap, n_rows)
    max_rt = max(align, (max_rt // align) * align)
    rt = align
    for cand in range(2 * align, max_rt + 1, align):
        if n_rows % cand == 0:
            rt = cand
    return rt


# --------------------------------------------------------------------------
# Kernels
# --------------------------------------------------------------------------
def _layernorm_kernel(x_ref, a_ref, b_ref, o_ref):
    """Row-wise LayerNorm (torch semantics) over the last axis of a (rt, D) block."""
    x = x_ref[...].astype(jnp.float32)               # keep math in f32 (v5e has no bf16 VPU)
    d = x.shape[-1]                                  # NOTE: requires d > 1 (unbiased std)
    mean = jnp.mean(x, axis=-1, keepdims=True)
    diff = x - mean
    var = jnp.sum(diff * diff, axis=-1, keepdims=True) / (d - 1)   # torch.std: unbiased
    # One reciprocal per row instead of D divides; approx=True (EUP) is a further
    # free win in production but kept exact here so the 1e-5 reference check holds.
    inv_std = pl.reciprocal(jnp.sqrt(var) + EPS, approx=False)
    y = (diff * inv_std) * a_ref[...].astype(jnp.float32) + b_ref[...].astype(jnp.float32)
    o_ref[...] = y.astype(o_ref.dtype)


def _residual_kernel(x_ref, y_ref, o_ref):
    """out = x + y elementwise on a (rt, D) block (generic-sublayer path only)."""
    o_ref[...] = x_ref[...] + y_ref[...]


def _fused_sublayer_kernel(x_ref, a_ref, b_ref, w_ref, bias_ref, o_ref):
    """Fused LayerNorm -> Linear (MXU) -> bias -> residual on a (rt, D) block.

    The residual add reuses x while it is still resident in VMEM, so the whole
    SublayerConnection is one HBM read of x / W and one HBM write of the output.
    """
    x = x_ref[...].astype(jnp.float32)               # (rt, D)
    d = x.shape[-1]
    mean = jnp.mean(x, axis=-1, keepdims=True)
    diff = x - mean
    var = jnp.sum(diff * diff, axis=-1, keepdims=True) / (d - 1)   # unbiased (torch.std)
    inv_std = pl.reciprocal(jnp.sqrt(var) + EPS, approx=False)
    normed = (diff * inv_std) * a_ref[...].astype(jnp.float32) + b_ref[...].astype(jnp.float32)
    y = jnp.dot(normed, w_ref[...].astype(jnp.float32),
                preferred_element_type=jnp.float32)                 # MXU
    y = y + bias_ref[...].astype(jnp.float32)
    o_ref[...] = (x + y).astype(o_ref.dtype)


# --------------------------------------------------------------------------
# Pallas wrappers
# --------------------------------------------------------------------------
def _compiler_params():
    return pltpu.CompilerParams(
        dimension_semantics=("parallel",),           # row axis shards across v7x's 2 TCs
        vmem_limit_bytes=_VMEM_LIMIT_BYTES)


def layernorm_pallas(x2d, a2, b2):
    R, D = x2d.shape
    rt = _pick_row_tile(R, D, n_bufs=4, itemsize=x2d.dtype.itemsize)   # x + out, double-buffered
    a2 = jnp.asarray(a2, x2d.dtype).reshape(1, D)
    b2 = jnp.asarray(b2, x2d.dtype).reshape(1, D)
    return pl.pallas_call(
        _layernorm_kernel,
        out_shape=jax.ShapeDtypeStruct((R, D), x2d.dtype),
        grid_spec=pltpu.PrefetchScalarGridSpec(
            num_scalar_prefetch=0,
            grid=(R // rt,),
            in_specs=[
                pl.BlockSpec((rt, D), lambda i: (i, 0)),
                pl.BlockSpec((1, D), lambda i: (0, 0)),   # invariant (1,D) operands
                pl.BlockSpec((1, D), lambda i: (0, 0)),
            ],
            out_specs=pl.BlockSpec((rt, D), lambda i: (i, 0)),
        ),
        compiler_params=_compiler_params(),
    )(x2d, a2, b2)


def residual_add_pallas(x2d, y2d):
    R, D = x2d.shape
    rt = _pick_row_tile(R, D, n_bufs=6, itemsize=x2d.dtype.itemsize)   # x, y, out double-buffered
    return pl.pallas_call(
        _residual_kernel,
        out_shape=jax.ShapeDtypeStruct((R, D), x2d.dtype),
        grid_spec=pltpu.PrefetchScalarGridSpec(
            num_scalar_prefetch=0,
            grid=(R // rt,),
            in_specs=[
                pl.BlockSpec((rt, D), lambda i: (i, 0)),
                pl.BlockSpec((rt, D), lambda i: (i, 0)),
            ],
            out_specs=pl.BlockSpec((rt, D), lambda i: (i, 0)),
        ),
        compiler_params=_compiler_params(),
    )(x2d, y2d)


def fused_sublayer_linear_pallas(x2d, a2, b2, w, bias):
    """One pallas_call: out = x + (LayerNorm(x) @ W + bias)."""
    R, D = x2d.shape
    assert w.shape == (D, D), "Linear sublayer must preserve the feature size"
    a2 = jnp.asarray(a2, x2d.dtype).reshape(1, D)
    b2 = jnp.asarray(b2, x2d.dtype).reshape(1, D)
    bias = jnp.asarray(bias, x2d.dtype).reshape(1, D)
    # Invariant operands (W double-buffered + gamma/beta/bias) count against the budget.
    fixed = 2 * D * D * w.dtype.itemsize + 6 * D * x2d.dtype.itemsize
    rt = _pick_row_tile(R, D, n_bufs=4, fixed_bytes=fixed, itemsize=x2d.dtype.itemsize)
    return pl.pallas_call(
        _fused_sublayer_kernel,
        out_shape=jax.ShapeDtypeStruct((R, D), x2d.dtype),
        grid_spec=pltpu.PrefetchScalarGridSpec(
            num_scalar_prefetch=0,
            grid=(R // rt,),
            in_specs=[
                pl.BlockSpec((rt, D), lambda i: (i, 0)),
                pl.BlockSpec((1, D), lambda i: (0, 0)),
                pl.BlockSpec((1, D), lambda i: (0, 0)),
                pl.BlockSpec((D, D), lambda i: (0, 0)),
                pl.BlockSpec((1, D), lambda i: (0, 0)),
            ],
            out_specs=pl.BlockSpec((rt, D), lambda i: (i, 0)),
        ),
        compiler_params=_compiler_params(),
    )(x2d, a2, b2, w, bias)


# --------------------------------------------------------------------------
# Module-level wrappers
# --------------------------------------------------------------------------
def sublayer_connection(x, a2, b2, sublayer_fn, dropout_p=0.0, training=False, rng=None):
    """Generic path: x + dropout(sublayer(LayerNorm(x))) with arbitrary sublayer_fn."""
    B, S, D = x.shape
    x2d = x.reshape(B * S, D)
    normed = layernorm_pallas(x2d, a2, b2).reshape(B, S, D)
    sub = sublayer_fn(normed)
    if training and dropout_p > 0.0:
        # TODO(synk): dropout stays in plain JAX; fuse with pltpu.prng_* if it ever matters.
        keep = jax.random.bernoulli(rng, 1.0 - dropout_p, sub.shape)
        sub = jnp.where(keep, sub / (1.0 - dropout_p), 0.0).astype(sub.dtype)
    out2d = residual_add_pallas(x2d, sub.reshape(B * S, D))
    return out2d.reshape(B, S, D)


def sublayer_connection_linear(x, a2, b2, w, bias, dropout_p=0.0, training=False, rng=None):
    """Fused path for a Linear sublayer (eval mode): one kernel, no intermediate HBM traffic."""
    B, S, D = x.shape
    linear_fn = lambda h: jnp.dot(h, w) + bias
    if training and dropout_p > 0.0:
        # Dropout sits between the matmul and the residual -> use the unfused path.
        return sublayer_connection(x, a2, b2, linear_fn, dropout_p, training, rng)
    if 2 * D * D * w.dtype.itemsize > 16 * 1024 * 1024:
        # Weight too large to keep resident in VMEM (v7x budget) -> unfused fallback.
        return sublayer_connection(x, a2, b2, linear_fn)
    out2d = fused_sublayer_linear_pallas(x.reshape(B * S, D), a2, b2, w, bias)
    return out2d.reshape(B, S, D)


# --------------------------------------------------------------------------
# Pure-JAX reference (mirrors the PyTorch module exactly, eval mode)
# --------------------------------------------------------------------------
def _reference(x, a2, b2, sublayer_fn):
    mean = jnp.mean(x, axis=-1, keepdims=True)
    var = jnp.sum((x - mean) ** 2, axis=-1, keepdims=True) / (x.shape[-1] - 1)
    std = jnp.sqrt(var)
    normed = a2 * (x - mean) / (std + EPS) + b2
    return x + sublayer_fn(normed)


# --------------------------------------------------------------------------
# Demo
# --------------------------------------------------------------------------
if __name__ == "__main__":
    # batch=2, seq=8, hidden=128 (lane-dense last dim; don't tune at D=32).
    B, S, D = 2, 8, 128
    key = jax.random.PRNGKey(0)
    kx, kw, kb, ka, kb2 = jax.random.split(key, 5)

    x = jax.random.normal(kx, (B, S, D), dtype=jnp.float32)

    # LayerNorm params (ones/zeros at init; perturb so scale/shift is exercised).
    a2 = 1.0 + 0.1 * jax.random.normal(ka, (D,), dtype=jnp.float32)
    b2 = 0.1 * jax.random.normal(kb2, (D,), dtype=jnp.float32)

    # Deterministic example "sublayer": a Linear(D, D).
    W = 0.05 * jax.random.normal(kw, (D, D), dtype=jnp.float32)
    bias = 0.05 * jax.random.normal(kb, (D,), dtype=jnp.float32)

    # --- Fused path: LayerNorm -> Linear (MXU) -> bias -> residual in one kernel ---
    out_fused = jax.block_until_ready(
        sublayer_connection_linear(x, a2, b2, W, bias, dropout_p=0.1, training=False))
    ref_lin = _reference(
        x, a2, b2,
        lambda h: jnp.dot(h, W, precision=jax.lax.Precision.HIGHEST) + bias)
    assert out_fused.shape == (B, S, D)
    # In-kernel MXU matmul (default precision) vs HIGHEST-precision reference.
    assert jnp.allclose(out_fused, ref_lin, atol=2e-2, rtol=2e-2)

    # --- Generic path: arbitrary sublayer (tanh) through LN + residual kernels ---
    tanh_fn = lambda h: jnp.tanh(h)
    out_gen = jax.block_until_ready(
        sublayer_connection(x, a2, b2, tanh_fn, dropout_p=0.1, training=False))
    ref_gen = _reference(x, a2, b2, tanh_fn)
    assert jnp.allclose(out_gen, ref_gen, atol=1e-5, rtol=1e-5)

    print("KERNEL_OK")
</pallas_src>

<mosaic_0001>
module attributes {stable_mosaic.version = 11 : i64} {
  func.func @_fused_sublayer_kernel(%arg0: i32, %arg1: memref<16x128xf32, #tpu.memory_space<vmem>>, %arg2: memref<1x128xf32, #tpu.memory_space<vmem>>, %arg3: memref<1x128xf32, #tpu.memory_space<vmem>>, %arg4: memref<128x128xf32, #tpu.memory_space<vmem>>, %arg5: memref<1x128xf32, #tpu.memory_space<vmem>>, %arg6: memref<16x128xf32, #tpu.memory_space<vmem>>) attributes {dimension_semantics = [#tpu.dimension_semantics<parallel>], iteration_bounds = array<i64: 1>, scalar_prefetch = 0 : i64, scratch_operands = 0 : i64, tpu.core_type = #tpu.core_type<tc>, window_params = [{transform_indices = @transform_0, window_bounds = array<i64: 16, 128>}, {pipeline_mode = #tpu.pipeline_mode<synchronous>, transform_indices = @transform_1, window_bounds = array<i64: 1, 128>}, {pipeline_mode = #tpu.pipeline_mode<synchronous>, transform_indices = @transform_2, window_bounds = array<i64: 1, 128>}, {pipeline_mode = #tpu.pipeline_mode<synchronous>, transform_indices = @transform_3, window_bounds = array<i64: 128, 128>}, {pipeline_mode = #tpu.pipeline_mode<synchronous>, transform_indices = @transform_4, window_bounds = array<i64: 1, 128>}, {transform_indices = @transform_5, window_bounds = array<i64: 16, 128>}]} {
    %c0 = arith.constant 0 : index
    %c0_0 = arith.constant 0 : index
    %0 = vector.load %arg1[%c0, %c0_0] : memref<16x128xf32, #tpu.memory_space<vmem>>, vector<16x128xf32>
    %cst = arith.constant dense<0.000000e+00> : vector<16xf32>
    %1 = vector.multi_reduction <add>, %0, %cst [1] : vector<16x128xf32> to vector<16xf32>
    %2 = vector.shape_cast %1 : vector<16xf32> to vector<16x1xf32>
    %cst_1 = arith.constant 1.280000e+02 : f32
    %3 = vector.broadcast %cst_1 : f32 to vector<16x1xf32>
    %4 = arith.divf %2, %3 : vector<16x1xf32>
    %5 = vector.broadcast %4 : vector<16x1xf32> to vector<16x128xf32>
    %6 = arith.subf %0, %5 : vector<16x128xf32>
    %7 = arith.mulf %6, %6 : vector<16x128xf32>
    %cst_2 = arith.constant dense<0.000000e+00> : vector<16xf32>
    %8 = vector.multi_reduction <add>, %7, %cst_2 [1] : vector<16x128xf32> to vector<16xf32>
    %9 = vector.shape_cast %8 : vector<16xf32> to vector<16x1xf32>
    %cst_3 = arith.constant 1.270000e+02 : f32
    %10 = vector.broadcast %cst_3 : f32 to vector<16x1xf32>
    %11 = arith.divf %9, %10 : vector<16x1xf32>
    %12 = math.sqrt %11 : vector<16x1xf32>
    %cst_4 = arith.constant 9.99999997E-7 : f32
    %13 = vector.broadcast %cst_4 : f32 to vector<16x1xf32>
    %14 = arith.addf %12, %13 : vector<16x1xf32>
    %15 = tpu.reciprocal %14 : vector<16x1xf32> -> vector<16x1xf32>
    %16 = vector.broadcast %15 : vector<16x1xf32> to vector<16x128xf32>
    %17 = arith.mulf %6, %16 : vector<16x128xf32>
    %c0_5 = arith.constant 0 : index
    %c0_6 = arith.constant 0 : index
    %18 = vector.load %arg2[%c0_5, %c0_6] : memref<1x128xf32, #tpu.memory_space<vmem>>, vector<1x128xf32>
    %19 = vector.broadcast %18 : vector<1x128xf32> to vector<16x128xf32>
    %20 = arith.mulf %17, %19 : vector<16x128xf32>
    %c0_7 = arith.constant 0 : index
    %c0_8 = arith.constant 0 : index
    %21 = vector.load %arg3[%c0_7, %c0_8] : memref<1x128xf32, #tpu.memory_space<vmem>>, vector<1x128xf32>
    %22 = vector.broadcast %21 : vector<1x128xf32> to vector<16x128xf32>
    %23 = arith.addf %20, %22 : vector<16x128xf32>
    %c0_9 = arith.constant 0 : index
    %c0_10 = arith.constant 0 : index
    %24 = vector.load %arg4[%c0_9, %c0_10] : memref<128x128xf32, #tpu.memory_space<vmem>>, vector<128x128xf32>
    %cst_11 = arith.constant dense<0.000000e+00> : vector<16x128xf32>
    %25 = tpu.matmul %23, %24, %cst_11 {dimension_numbers = #tpu.dot_dimension_numbers<[1], [0], [0], [1], [0, 0, 1, 1], [], []>} : vector<16x128xf32>, vector<128x128xf32>, vector<16x128xf32> -> vector<16x128xf32>
    %c0_12 = arith.constant 0 : index
    %c0_13 = arith.constant 0 : index
    %26 = vector.load %arg5[%c0_12, %c0_13] : memref<1x128xf32, #tpu.memory_space<vmem>>, vector<1x128xf32>
    %27 = vector.broadcast %26 : vector<1x128xf32> to vector<16x128xf32>
    %28 = arith.addf %25, %27 : vector<16x128xf32>
    %29 = arith.addf %0, %28 : vector<16x128xf32>
    %c0_14 = arith.constant 0 : index
    %c0_15 = arith.constant 0 : index
    %30 = vector.load %arg6[%c0_14, %c0_15] : memref<16x128xf32, #tpu.memory_space<vmem>>, vector<16x128xf32>
    tpu.vector_store %arg6[%c0_14, %c0_15], %29 {strides = array<i32>} : memref<16x128xf32, #tpu.memory_space<vmem>>, vector<16x128xf32>,
    return
  }
  func.func @transform_0(%arg0: i32) -> (i32, i32) {
    %c0_i32 = arith.constant 0 : i32
    %c0_i32_0 = arith.constant 0 : i32
    return %arg0, %c0_i32 : i32, i32
  }
  func.func @transform_1(%arg0: i32) -> (i32, i32) {
    %c0_i32 = arith.constant 0 : i32
    %c0_i32_0 = arith.constant 0 : i32
    %c0_i32_1 = arith.constant 0 : i32
    return %c0_i32, %c0_i32_0 : i32, i32
  }
  func.func @transform_2(%arg0: i32) -> (i32, i32) {
    %c0_i32 = arith.constant 0 : i32
    %c0_i32_0 = arith.constant 0 : i32
    %c0_i32_1 = arith.constant 0 : i32
    return %c0_i32, %c0_i32_0 : i32, i32
  }
  func.func @transform_3(%arg0: i32) -> (i32, i32) {
    %c0_i32 = arith.constant 0 : i32
    %c0_i32_0 = arith.constant 0 : i32
    %c0_i32_1 = arith.constant 0 : i32
    return %c0_i32, %c0_i32_0 : i32, i32
  }
  func.func @transform_4(%arg0: i32) -> (i32, i32) {
    %c0_i32 = arith.constant 0 : i32
    %c0_i32_0 = arith.constant 0 : i32
    %c0_i32_1 = arith.constant 0 : i32
    return %c0_i32, %c0_i32_0 : i32, i32
  }
  func.func @transform_5(%arg0: i32) -> (i32, i32) {
    %c0_i32 = arith.constant 0 : i32
    %c0_i32_0 = arith.constant 0 : i32
    return %arg0, %c0_i32 : i32, i32
  }
}

</mosaic_0001>

<bundles_post_ra>
// kernel: tpu_custom_call.1
= control target key start
LH: loop header
LB: loop body
LE: loop exit
PB: predicated region body
PF: predicated region fallthrough
CT: control target
= control target key end

     0   :  { %10 = vsyncpa [#allocation3], 0  ;;  %s459_s0 = inlined_call_operand.hbm [shape: f32[16,128], index: 0, kind: input, shape index: {}]   ;;  %s460_s1 = inlined_call_operand.hbm [shape: f32[1,128], index: 1, kind: input, shape index: {}]   ;;  %s461_s2 = inlined_call_operand.vmem [shape: f32[1,128], index: 2, kind: input, shape index: {}]   ;;  %s462_s3 = inlined_call_operand.hbm [shape: f32[128,128], index: 3, kind: input, shape index: {}]   ;;  %s463_s4 = inlined_call_operand.vmem [shape: f32[1,128], index: 4, kind: input, shape index: {}]   ;;  %s464_s5 = inlined_call_operand.hbm [shape: f32[16,128], index: 5, kind: output, shape index: {}]  }
   0x1   :  { %11 = vsyncpa [#allocation6], 0  ;;  %s31_s20 = sshll.u32 %s460_s1, 4  ;;  %s32_s20 = int_to_ptr.hbm [resolvable:$true] %s31_s20 }
   0x2   :  { %12 = vsyncpa [#allocation4], 0  ;;  %s374_s21 = smov [#allocation5]   ;;  %s17_s25 = sshll.u32 %s459_s0, 4  ;;  %s18_s25 = int_to_ptr.hbm [resolvable:$true] %s17_s25 }
   0x3   :  { %s33_s22 = sshll.u32 %s374_s21, 4  ;;  %s375_s26 = smov [#allocation2]   ;;  %s34_s22 = int_to_ptr.vmem [resolvable:$true] %s33_s22 }
   0x4   :  { %36 = dma.hbm_to_vmem [thread:$0]  %s32_s20, 16, %s34_s22, [#allocation6]  }
   0x5   :  { %s19_s27 = sshll.u32 %s375_s26, 4  ;;  %s376_s28 = smov 128   ;;  %s20_s27 = int_to_ptr.vmem [resolvable:$true] %s19_s27 }
   0x6   :  { %s377_s29 = smov 8   ;;  %s43_s6 = sshll.u32 %s462_s3, 4  ;;  %s44_s6 = int_to_ptr.hbm [resolvable:$true] %s43_s6 }
   0x7   :  { %25 = dma.hbm_to_vmem [thread:$0]  %s18_s25, 256, %s20_s27, [#allocation3], %s376_s28, %s376_s28, %s377_s29  }
   0x8   :  { %s378_s7 = smov [#allocation7]  }
   0x9   :  { %s45_s8 = sshll.u32 %s378_s7, 4  ;;  %s46_s8 = int_to_ptr.vmem [resolvable:$true] %s45_s8 }
   0xa   :  { %51 = dma.hbm_to_vmem [thread:$0]  %s44_s6, 2048, %s46_s8, [#allocation6], %s376_s28, %s376_s28, %s377_s29  }
   0xb   :  { %368 = dma.done.wait [#allocation3], 256  }
   0xc   :  { %369 = vsyncadd [#allocation3], 4294967040 }
   0xd   :  { %370 = dma.done.wait [#allocation6], 2064  }
   0xe   :  { %371 = vsyncadd [#allocation6], 4294965232  ;;  %v427_v0 = vld [vmem:[#allocation2] sm:$0xff]  ;;  %v430_v1 = vld [vmem:[#allocation2 + $0x8] sm:$0xff]  ;;  %v379_v2 = vmov 128.0   ;;  %v380_v17 = vmov 127.0  }
   0xf   :  { %68 = vadd.xlane.f32.xlu0 %v427_v0  ;;  %260 = vrcp.f32 %v379_v2  ;;  %v181_v20 = vld [vmem:[#allocation7 + $0x78] sm:$0xff]  ;;  %v180_v22 = vld [vmem:[#allocation7 + $0x70] sm:$0xff]  ;;  %v179_v23 = vld [vmem:[#allocation7 + $0x68] sm:$0xff]  ;;  %s381_s10 = smov [#allocation8]   ;;  %s219_s14 = sshll.u32 %s464_s5, 4  ;;  %s220_s14 = int_to_ptr.hbm [resolvable:$true] %s219_s14 }
  0x10   :  { %262 = vrcp.f32 %v380_v17  ;;  %186 = vmatpush.msra.mxu0 %v181_v20  ;;  %233 = vmatpush.msra.mxu1 %v181_v20  ;;  %v178_v25 = vld [vmem:[#allocation7 + $0x60] sm:$0xff]  ;;  %v177_v26 = vld [vmem:[#allocation7 + $0x58] sm:$0xff]  ;;  %v176_v28 = vld [vmem:[#allocation7 + $0x50] sm:$0xff]  ;;  %s217_s11 = sshll.u32 %s381_s10, 4  ;;  %s218_s11 = int_to_ptr.vmem [resolvable:$true] %s217_s11 }
  0x11   :  { %v175_v29 = vld [vmem:[#allocation7 + $0x48] sm:$0xff]  ;;  %v174_v30 = vld [vmem:[#allocation7 + $0x40] sm:$0xff]  ;;  %v173_v32 = vld [vmem:[#allocation7 + $0x38] sm:$0xff] }
  0x12   :  { %187 = vmatpush.msra.mxu0 %v180_v22  ;;  %234 = vmatpush.msra.mxu1 %v180_v22  ;;  %v172_v35 = vld [vmem:[#allocation7 + $0x30] sm:$0xff]  ;;  %v171_v36 = vld [vmem:[#allocation7 + $0x28] sm:$0xff]  ;;  %v170_v37 = vld [vmem:[#allocation7 + $0x20] sm:$0xff] }
  0x13   :  { %v169_v38 = vld [vmem:[#allocation7 + $0x18] sm:$0xff]  ;;  %v168_v42 = vld [vmem:[#allocation7 + $0x10] sm:$0xff]  ;;  %v167_v44 = vld [vmem:[#allocation7 + $0x8] sm:$0xff] }
  0x14   :  { %188 = vmatpush.msra.mxu0 %v179_v23  ;;  %235 = vmatpush.msra.mxu1 %v179_v23  ;;  %v166_v46 = vld [vmem:[#allocation7] sm:$0xff]  ;;  %v258_v20 = vld [vmem:[%s461_s2] ss:$0 sm:$0xff] }
  0x15   :  { %v261_v3 = vpop.eup %260 }
  0x16   :  { %v73_v4 = vmul.f32 128.0, %v261_v3  ;;  %vm77_vm0 = vweird.f32 %v261_v3  ;;  %v263_v18 = vpop.eup %262  ;;  %189 = vmatpush.msra.mxu0 %v178_v25  ;;  %236 = vmatpush.msra.mxu1 %v178_v25 }
  0x17   :  { %70 = vadd.xlane.f32.xlu0 %v430_v1  ;;  %v90_v19 = vmul.f32 127.0, %v263_v18  ;;  %vm94_vm1 = vweird.f32 %v263_v18 }
  0x18   :  { %v74_v5 = vsub.f32 1.0, %v73_v4  ;;  %190 = vmatpush.msra.mxu0 %v177_v26  ;;  %237 = vmatpush.msra.mxu1 %v177_v26 }
  0x19   :  { %v91_v21 = vsub.f32 1.0, %v90_v19 }
  0x1a   :  { %v75_v6 = vmul.f32 %v261_v3, %v74_v5  ;;  %191 = vmatpush.msra.mxu0 %v176_v28  ;;  %238 = vmatpush.msra.mxu1 %v176_v28 }
  0x1b   :  { %v92_v24 = vmul.f32 %v263_v18, %v91_v21 }
  0x1c   :  { %v76_v7 = vadd.f32 %v261_v3, %v75_v6  ;;  %192 = vmatpush.msra.mxu0 %v175_v29  ;;  %239 = vmatpush.msra.mxu1 %v175_v29 }
  0x1d   :  { %v93_v27 = vadd.f32 %v263_v18, %v92_v24 }
  0x1e   :  { %v78_v8 = vsel %vm77_vm0, %v261_v3, %v76_v7  ;;  %193 = vmatpush.msra.mxu0 %v174_v30  ;;  %240 = vmatpush.msra.mxu1 %v174_v30 }
  0x1f   :  { %v95_v31 = vsel %vm94_vm1, %v263_v18, %v93_v27 }
  0x20   :  { %194 = vmatpush.msra.mxu0 %v173_v32  ;;  %241 = vmatpush.msra.mxu1 %v173_v32 }
  0x22   :  { %195 = vmatpush.msra.mxu0 %v172_v35  ;;  %242 = vmatpush.msra.mxu1 %v172_v35 }
  0x24   :  { %196 = vmatpush.msra.mxu0 %v171_v36  ;;  %243 = vmatpush.msra.mxu1 %v171_v36 }
  0x26   :  { %197 = vmatpush.msra.mxu0 %v170_v37  ;;  %244 = vmatpush.msra.mxu1 %v170_v37 }
  0x28   :  { %198 = vmatpush.msra.mxu0 %v169_v38  ;;  %245 = vmatpush.msra.mxu1 %v169_v38 }
  0x2a   :  { %199 = vmatpush.msra.mxu0 %v168_v42  ;;  %246 = vmatpush.msra.mxu1 %v168_v42 }
  0x2c   :  { %200 = vmatpush.msra.mxu0 %v167_v44  ;;  %247 = vmatpush.msra.mxu1 %v167_v44 }
  0x2e   :  { %201 = vmatpush.msra.mxu0 %v166_v46  ;;  %248 = vmatpush.msra.mxu1 %v166_v46 }
  0x82   :  { %v69_v9 = vpop.xlane.xlu0 %68 }
  0x83   :  { %v79_v10 = vmul.f32 %v78_v8, %v69_v9 }
  0x85   :  { %v434_v11 = vsub.f32 %v427_v0, %v79_v10 }
  0x87   :  { %v83_v12 = vmul.f32 %v434_v11, %v434_v11 }
  0x89   :  { %85 = vadd.xlane.f32.xlu1 %v83_v12 }
  0x8a   :  { %v71_v13 = vpop.xlane.xlu0 %70 }
  0x8b   :  { %v80_v14 = vmul.f32 %v78_v8, %v71_v13 }
  0x8d   :  { %v439_v15 = vsub.f32 %v430_v1, %v80_v14 }
  0x8f   :  { %v84_v16 = vmul.f32 %v439_v15, %v439_v15 }
  0x91   :  { %87 = vadd.xlane.f32.xlu1 %v84_v16  ;;  %v257_v16 = vld [vmem:[#allocation5] ss:$0 sm:$0xff] }
  0xfc   :  { %v86_v33 = vpop.xlane.xlu1 %85 }
  0xfd   :  { %v96_v34 = vmul.f32 %v95_v31, %v86_v33  ;;  %v259_v33 = vld [vmem:[%s463_s4] ss:$0 sm:$0xff] }
  0xff   :  { %264 = vrsqrt.f32 %v96_v34  ;;  %vm105_vm2 = vcmp.eq.f32.partialorder %v96_v34, inf  ;;  %v108_v54 = vand.u32 2147483648, %v96_v34  ;;  %vm107_vm3 = vcmp.eq.f32.partialorder %v96_v34, 0.0 }
 0x104   :  { %v88_v39 = vpop.xlane.xlu1 %87 }
 0x105   :  { %v265_v40 = vpop.eup %264  ;;  %v97_v41 = vmul.f32 %v95_v31, %v88_v39 }
 0x106   :  { %v99_v43 = vmul.f32 %v265_v40, %v96_v34 }
 0x107   :  { %266 = vrsqrt.f32 %v97_v41  ;;  %vm117_vm4 = vcmp.eq.f32.partialorder %v97_v41, inf  ;;  %v120_v62 = vand.u32 2147483648, %v97_v41  ;;  %vm119_vm5 = vcmp.eq.f32.partialorder %v97_v41, 0.0 }
 0x108   :  { %v100_v45 = vmul.f32 %v265_v40, %v99_v43 }
 0x10a   :  { %v101_v47 = vmul.f32 0.5, %v100_v45 }
 0x10c   :  { %v102_v48 = vsub.f32 1.5, %v101_v47 }
 0x10d   :  { %v267_v49 = vpop.eup %266 }
 0x10e   :  { %v103_v50 = vmul.f32 %v265_v40, %v102_v48  ;;  %v111_v51 = vmul.f32 %v267_v49, %v97_v41 }
 0x110   :  { %v104_v52 = vmul.f32 %v103_v50, %v96_v34  ;;  %v112_v53 = vmul.f32 %v267_v49, %v111_v51 }
 0x112   :  { %v113_v55 = vmul.f32 0.5, %v112_v53  ;;  %v106_v56 = vsel %vm105_vm2, %v96_v34, %v104_v52 }
 0x113   :  { %v109_v57 = vsel %vm107_vm3, %v108_v54, %v106_v56 }
 0x114   :  { %v114_v58 = vsub.f32 1.5, %v113_v55  ;;  %v122_v59 = vadd.f32 1e-06, %v109_v57 }
 0x116   :  { %v115_v60 = vmul.f32 %v267_v49, %v114_v58  ;;  %268 = vrcp.f32 %v122_v59  ;;  %v135_v7 = vand.u32 2147483648, %v122_v59  ;;  %v133_v9 = vand.u32 2147483647, %v122_v59 }
 0x117   :  { %vm129_vm7 = vweird.f32 %v122_v59 }
 0x118   :  { %v116_v61 = vmul.f32 %v115_v60, %v97_v41  ;;  %v136_v13 = vor.u32 1.1754944e-38, %v135_v7  ;;  %vm134_vm9 = vcmp.eq.f32.partialorder %v133_v9, 8.507059e+37 }
 0x11a   :  { %v118_v63 = vsel %vm117_vm4, %v97_v41, %v116_v61 }
 0x11b   :  { %v121_v2 = vsel %vm119_vm5, %v120_v62, %v118_v63 }
 0x11c   :  { %v269_v3 = vpop.eup %268  ;;  %v123_v4 = vadd.f32 1e-06, %v121_v2 }
 0x11d   :  { %v125_v5 = vmul.f32 %v269_v3, %v122_v59  ;;  %vm130_vm6 = vweird.f32 %v269_v3 }
 0x11e   :  { %270 = vrcp.f32 %v123_v4  ;;  %vm131_vm8 = vmor %vm129_vm7, %vm130_vm6  ;;  %v149_v22 = vand.u32 2147483648, %v123_v4  ;;  %v147_v25 = vand.u32 2147483647, %v123_v4  ;;  %vm143_vm11 = vweird.f32 %v123_v4 }
 0x11f   :  { %v126_v6 = vsub.f32 1.0, %v125_v5 }
 0x120   :  { %v150_v28 = vor.u32 1.1754944e-38, %v149_v22  ;;  %vm148_vm13 = vcmp.eq.f32.partialorder %v147_v25, 8.507059e+37 }
 0x121   :  { %v127_v8 = vmul.f32 %v269_v3, %v126_v6 }
 0x123   :  { %v128_v10 = vadd.f32 %v269_v3, %v127_v8 }
 0x124   :  { %v271_v12 = vpop.eup %270 }
 0x125   :  { %v132_v14 = vsel %vm131_vm8, %v269_v3, %v128_v10  ;;  %v139_v17 = vmul.f32 %v271_v12, %v123_v4  ;;  %vm144_vm10 = vweird.f32 %v271_v12 }
 0x126   :  { %v137_v18 = vsel %vm134_vm9, %v136_v13, %v132_v14  ;;  %vm145_vm12 = vmor %vm143_vm11, %vm144_vm10 }
 0x127   :  { %v152_v19 = vmul.f32 %v137_v18, %v434_v11  ;;  %v140_v21 = vsub.f32 1.0, %v139_v17 }
 0x129   :  { %v158_v23 = vmul.f32 %v257_v16, %v152_v19  ;;  %v141_v24 = vmul.f32 %v271_v12, %v140_v21 }
 0x12b   :  { %v164_v26 = vadd.f32 %v258_v20, %v158_v23  ;;  %v142_v27 = vadd.f32 %v271_v12, %v141_v24 }
 0x12d   :  { %202 = vmatmul.f32.vlgmr.msra.gmra.mxu0 %v164_v26  ;;  %v146_v29 = vsel %vm145_vm12, %v271_v12, %v142_v27 }
 0x12e   :  { %v151_v30 = vsel %vm148_vm13, %v150_v28, %v146_v29 }
 0x12f   :  { %v153_v11 = vmul.f32 %v151_v30, %v439_v15 }
 0x131   :  { %v159_v31 = vmul.f32 %v257_v16, %v153_v11 }
 0x133   :  { %v165_v32 = vadd.f32 %v258_v20, %v159_v31 }
 0x135   :  { %205 = vmatmul.f32.vlgmr.msra.gmra.mxu1 %v165_v32 }
 0x1aa   :  { %v203_v34 = vpop.f32.mrf.mxu0 }
 0x1ab   :  { %v204_v35 = vadd.f32 %v259_v33, %v203_v34 }
 0x1ad   :  { %v209_v36 = vadd.f32 %v204_v35, %v427_v0 }
 0x1af   :  { %211 = vst [vmem:[#allocation8] sm:$0xff] %v209_v36 }
 0x1b2   :  { %v206_v37 = vpop.f32.mrf.mxu1 }
 0x1b3   :  { %v207_v15 = vadd.f32 %v259_v33, %v206_v37 }
 0x1b5   :  { %v210_v38 = vadd.f32 %v207_v15, %v430_v1 }
 0x1b7   :  { %212 = vst [vmem:[#allocation8 + $0x8] sm:$0xff] %v210_v38 }
 0x1b8   :  { %225 = dma.vmem_to_hbm [thread:$0]  %s218_s11, 256, %s220_s14, [#allocation4], %s376_s28, %s376_s28, %s377_s29  }
 0x1b9   :  { %372 = dma.done.wait [#allocation4], 256  }
 0x1ba   :  { %373 = vsyncadd [#allocation4], 4294967040 }
 0x1bb   :  { %230 = vsyncpa [#allocation3], 1 }
 0x1bc   :  { %231 = vsyncpa [#allocation6], 1 }
 0x1bd   :  { %232 = vsyncpa [#allocation4], 1 }

</bundles_post_ra>
